<compile_context>
chip_gen: v6e
topology: v6e:2x2x1
jax: 0.10.0
libtpu: 0.0.40
codegen_flags: <defaults>
</compile_context>

<pallas_src>
import functools

import jax
import jax.numpy as jnp
from jax.experimental import pallas as pl
from jax.experimental.pallas import tpu as pltpu

EXPECTED_DTYPE = jnp.bfloat16  # autocast dtype ("expected_dtype" in the module)

IN_FEATURES = 32
OUT_FEATURES = 2
N_PADDED = 128          # lane-dense output width (one full lane group / MXU column)
SUBLANE_PACK = 16       # bf16 sublane packing
DEFAULT_TILE_B = 4096   # fits scoped-VMEM defaults on v5e / v6e / v7x


def _round_up(n, m):
    return ((n + m - 1) // m) * m


def prepare_params(weight, bias):
    """One-time parameter prep ("autocast" cast + lane-dense padding).

    weight: (2, 32) float32 (PyTorch Linear layout)
    bias:   (2,)    float32
    Returns (w_slab, b_slab): (32, 128) and (1, 128) bfloat16, zero-padded past
    column OUT_FEATURES.
    """
    w_slab = jnp.zeros((IN_FEATURES, N_PADDED), jnp.float32)
    w_slab = w_slab.at[:, :OUT_FEATURES].set(weight.T)
    b_slab = jnp.zeros((1, N_PADDED), jnp.float32)
    b_slab = b_slab.at[:, :OUT_FEATURES].set(bias)
    return w_slab.astype(EXPECTED_DTYPE), b_slab.astype(EXPECTED_DTYPE)


def _linear_kernel(x_ref, w_ref, b_ref, o_ref):
    # x_ref: (TB, 32) bf16, w_ref: (32, 128) bf16, b_ref: (1, 128) bf16,
    # o_ref: (TB, 128) bf16.  bf16 inputs, f32 MXU accumulation, bf16 output.
    acc = jnp.dot(x_ref[...], w_ref[...], preferred_element_type=jnp.float32)
    o_ref[...] = (acc + b_ref[...].astype(jnp.float32)).astype(o_ref.dtype)


@functools.partial(jax.jit, static_argnames=("tile_b",))
def mixed_precision_linear(x, w_slab, b_slab, *, tile_b=DEFAULT_TILE_B):
    """Forward of MixedPrecisionModule.

    x:      (B, 32), must already be EXPECTED_DTYPE (mirrors the dtype assert).
    w_slab: (32, 128) bf16 from prepare_params().
    b_slab: (1, 128)  bf16 from prepare_params().
    Returns (B, 2) in EXPECTED_DTYPE.
    """
    assert x.dtype == EXPECTED_DTYPE, f"expected {EXPECTED_DTYPE}, got {x.dtype}"
    B = x.shape[0]

    # Pick a batch tile: multiple of the bf16 sublane pack, capped so a single
    # double-buffered block stays well inside scoped VMEM on every chip.
    tb = min(tile_b, _round_up(B, SUBLANE_PACK))
    b_padded = _round_up(B, tb)
    if b_padded != B:
        x = jnp.pad(x, ((0, b_padded - B), (0, 0)))

    grid = (b_padded // tb,)

    out = pl.pallas_call(
        _linear_kernel,
        out_shape=jax.ShapeDtypeStruct((b_padded, N_PADDED), EXPECTED_DTYPE),
        grid_spec=pltpu.PrefetchScalarGridSpec(
            num_scalar_prefetch=0,
            grid=grid,
            in_specs=[
                pl.BlockSpec((tb, IN_FEATURES), lambda i: (i, 0)),
                pl.BlockSpec((IN_FEATURES, N_PADDED), lambda i: (0, 0)),
                pl.BlockSpec((1, N_PADDED), lambda i: (0, 0)),
            ],
            out_specs=pl.BlockSpec((tb, N_PADDED), lambda i: (i, 0)),
        ),
        compiler_params=pltpu.CompilerParams(
            dimension_semantics=("parallel",),
        ),
    )(x, w_slab, b_slab)

    result = out[:B, :OUT_FEATURES]
    assert result.dtype == EXPECTED_DTYPE
    return result


if __name__ == "__main__":
    key = jax.random.PRNGKey(0)
    k_x, k_w, k_b = jax.random.split(key, 3)

    B = 8
    # PyTorch Linear(32, 2) shapes: W (2, 32), b (2,), uniform(-1/sqrt(32), 1/sqrt(32))
    bound = 1.0 / (IN_FEATURES ** 0.5)
    weight = jax.random.uniform(k_w, (OUT_FEATURES, IN_FEATURES),
                                minval=-bound, maxval=bound, dtype=jnp.float32)
    bias = jax.random.uniform(k_b, (OUT_FEATURES,),
                              minval=-bound, maxval=bound, dtype=jnp.float32)

    x = jax.random.normal(k_x, (B, IN_FEATURES), dtype=jnp.float32).astype(EXPECTED_DTYPE)

    # One-time parameter prep (hoisted out of the per-call path).
    w_slab, b_slab = prepare_params(weight, bias)

    out = mixed_precision_linear(x, w_slab, b_slab)
    jax.block_until_ready(out)

    # Reference (plain JAX, same bf16 compute path with f32 accumulation).
    ref = (x.astype(jnp.float32)
           @ weight.astype(EXPECTED_DTYPE).astype(jnp.float32).T
           + bias.astype(EXPECTED_DTYPE).astype(jnp.float32)).astype(EXPECTED_DTYPE)

    assert out.shape == (B, OUT_FEATURES)
    assert out.dtype == EXPECTED_DTYPE
    assert jnp.allclose(out.astype(jnp.float32), ref.astype(jnp.float32),
                        atol=1e-2, rtol=1e-2)

    print("KERNEL_OK")
</pallas_src>

<mosaic_0001>
module attributes {stable_mosaic.version = 11 : i64} {
  func.func @_linear_kernel(%arg0: i32, %arg1: memref<16x32xbf16, #tpu.memory_space<vmem>>, %arg2: memref<32x128xbf16, #tpu.memory_space<vmem>>, %arg3: memref<1x128xbf16, #tpu.memory_space<vmem>>, %arg4: memref<16x128xbf16, #tpu.memory_space<vmem>>) attributes {dimension_semantics = [#tpu.dimension_semantics<parallel>], iteration_bounds = array<i64: 1>, scalar_prefetch = 0 : i64, scratch_operands = 0 : i64, tpu.core_type = #tpu.core_type<tc>, window_params = [{transform_indices = @transform_0, window_bounds = array<i64: 16, 32>}, {pipeline_mode = #tpu.pipeline_mode<synchronous>, transform_indices = @transform_1, window_bounds = array<i64: 32, 128>}, {pipeline_mode = #tpu.pipeline_mode<synchronous>, transform_indices = @transform_2, window_bounds = array<i64: 1, 128>}, {transform_indices = @transform_3, window_bounds = array<i64: 16, 128>}]} {
    %c0 = arith.constant 0 : index
    %c0_0 = arith.constant 0 : index
    %0 = vector.load %arg1[%c0, %c0_0] : memref<16x32xbf16, #tpu.memory_space<vmem>>, vector<16x32xbf16>
    %c0_1 = arith.constant 0 : index
    %c0_2 = arith.constant 0 : index
    %1 = vector.load %arg2[%c0_1, %c0_2] : memref<32x128xbf16, #tpu.memory_space<vmem>>, vector<32x128xbf16>
    %cst = arith.constant dense<0.000000e+00> : vector<16x128xf32>
    %2 = tpu.matmul %0, %1, %cst {dimension_numbers = #tpu.dot_dimension_numbers<[1], [0], [0], [1], [0, 0, 1, 1], [], []>} : vector<16x32xbf16>, vector<32x128xbf16>, vector<16x128xf32> -> vector<16x128xf32>
    %c0_3 = arith.constant 0 : index
    %c0_4 = arith.constant 0 : index
    %3 = vector.load %arg3[%c0_3, %c0_4] : memref<1x128xbf16, #tpu.memory_space<vmem>>, vector<1x128xbf16>
    %4 = arith.extf %3 : vector<1x128xbf16> to vector<1x128xf32>
    %5 = vector.broadcast %4 : vector<1x128xf32> to vector<16x128xf32>
    %6 = arith.addf %2, %5 : vector<16x128xf32>
    %7 = arith.truncf %6 : vector<16x128xf32> to vector<16x128xbf16>
    %c0_5 = arith.constant 0 : index
    %c0_6 = arith.constant 0 : index
    %8 = vector.load %arg4[%c0_5, %c0_6] : memref<16x128xbf16, #tpu.memory_space<vmem>>, vector<16x128xbf16>
    tpu.vector_store %arg4[%c0_5, %c0_6], %7 {strides = array<i32>} : memref<16x128xbf16, #tpu.memory_space<vmem>>, vector<16x128xbf16>,
    return
  }
  func.func @transform_0(%arg0: i32) -> (i32, i32) {
    %c0_i32 = arith.constant 0 : i32
    %c0_i32_0 = arith.constant 0 : i32
    return %arg0, %c0_i32 : i32, i32
  }
  func.func @transform_1(%arg0: i32) -> (i32, i32) {
    %c0_i32 = arith.constant 0 : i32
    %c0_i32_0 = arith.constant 0 : i32
    %c0_i32_1 = arith.constant 0 : i32
    return %c0_i32, %c0_i32_0 : i32, i32
  }
  func.func @transform_2(%arg0: i32) -> (i32, i32) {
    %c0_i32 = arith.constant 0 : i32
    %c0_i32_0 = arith.constant 0 : i32
    %c0_i32_1 = arith.constant 0 : i32
    return %c0_i32, %c0_i32_0 : i32, i32
  }
  func.func @transform_3(%arg0: i32) -> (i32, i32) {
    %c0_i32 = arith.constant 0 : i32
    %c0_i32_0 = arith.constant 0 : i32
    return %arg0, %c0_i32 : i32, i32
  }
}

</mosaic_0001>

<bundles_post_ra>
// kernel: mixed_precision_linear.1
= control target key start
LH: loop header
LB: loop body
LE: loop exit
PB: predicated region body
PF: predicated region fallthrough
CT: control target
= control target key end

     0   :  { %8 = vsyncpa [#allocation3], 0  ;;  %s172_s12 = smov [#allocation2]   ;;  %s209_s0 = inlined_call_operand.vmem [shape: bf16[16,32], index: 0, kind: input, shape index: {}]   ;;  %s210_s1 = inlined_call_operand.hbm [shape: bf16[32,128], index: 1, kind: input, shape index: {}]   ;;  %s211_s2 = inlined_call_operand.vmem [shape: bf16[1,128], index: 2, kind: input, shape index: {}]   ;;  %s212_s3 = inlined_call_operand.vmem [shape: bf16[16,128], index: 3, kind: output, shape index: {}]  }
   0x1   :  { %s16_s13 = sshll.u32 %s172_s12, 4  ;;  %s17_s13 = int_to_ptr.vmem [resolvable:$true] %s16_s13 }
   0x2   :  { %s158_s14 = scalar_lea.vmem %s17_s13, 256  ;;  %p163_p1 = scmp.lt.s32.totalorder %s17_s13, %s17_s13 }
   0x3   :  { %p159_p0 = scmp.ne.s32.totalorder %s17_s13, %s158_s14  ;;  %p164_p2 = scmp.lt.s32.totalorder %s158_s14, %s158_s14 }
   0x5   :  { %p165_p3 = por %p164_p2, %p163_p1 }
   0x7   :  { %p166_p4 = pnand %p165_p3, %p159_p0 }
   0x9   :  { %169 = shalt.err (!%p166_p4)
}
   0xa   :  { %s173_s15 = smov 64   ;;  %s174_s16 = smov 4  }
   0xb   :  { %22 = dma.hbm_to_vmem [thread:$0]  %s210_s1, 256, %s17_s13, [#allocation3], %s173_s15, %s173_s15, %s174_s16  }
   0xc   :  { %170 = dma.done.wait [#allocation3], 256  }
   0xd   :  { %171 = vsyncadd [#allocation3], 4294967040  ;;  %v175_v0 = vmov 0.0   ;;  %vm176_vm0 = vmmov 0   ;;  %v147_v1 = vld [vmem:[#allocation2 + $0x8] sm:$0xff]   ;;  %v148_v2 = vld [vmem:[#allocation2] sm:$0xff]   ;;  %v37_v4 = vlaneseq }
   0xe   :  { %134 = vmatprep.subr.bf16.mxu0 %v175_v0  ;;  %138 = vmatprep.mubr.msk.bf16.mxu0 %vm176_vm0, %v175_v0  ;;  %v149_v3 = vld [vmem:[%s209_s0] sm:$0xff]   ;;  %vm58_vm1 = vcmask 261120  }
   0xf   :  { %135 = vmatpush3.bf16.msra.mxu0 %v147_v1  ;;  %v38_v5 = vshrl.u32 %v37_v4, 7  ;;  %v35_v6 = vld [vmem:[%s211_s2] sm:$0x1] }
  0x10   :  { %136 = vmatprep.subr.bf16.mxu0 %v175_v0  ;;  %v36_v7 = vunpack.c.l.bf16 %v35_v6 }
  0x11   :  { %v39_v8 = vsub.s32 0, %v38_v5 }
  0x13   :  { %137 = vmatpush3.bf16.msra.mxu0 %v148_v2  ;;  %v40_v10 = vrot.slane %v36_v7, %v39_v8 }
  0x16   :  { %139 = vmatmul.mubr.msk.bf16.vlgmr.msra.gmra.mxu0 %vm58_vm1, %v149_v3 }
  0xd6   :  { %v96_v9 = vpop.f32.mrf.mxu0 }
  0xd7   :  { %v97_v13 = vadd.f32 %v96_v9, %v40_v10 }
  0xd8   :  { %v140_v11 = vpop.f32.mrf.mxu0 }
  0xda   :  { %v99_v12 = vpop.f32.mrf.mxu0 }
  0xdb   :  { %v100_v14 = vadd.f32 %v99_v12, %v40_v10 }
  0xdc   :  { %v141_v15 = vpop.f32.mrf.mxu0 }
  0xdd   :  { %v129_v16 = vpack.c.bf16 %v100_v14, %v97_v13 }
  0xdf   :  { %130 = vst [vmem:[%s212_s3] sm:$0xff] %v129_v16  }
  0xe0   :  { %117 = vsyncpa [#allocation3], 1 }

</bundles_post_ra>
